<compile_context>
chip_gen: v7x
topology: tpu7x:2x2x1
jax: 0.10.0
libtpu: 0.0.40
codegen_flags: <defaults>
</compile_context>

<pallas_src>
import functools

import jax
import jax.numpy as jnp
from jax.experimental import pallas as pl
from jax.experimental.pallas import tpu as pltpu


def _attnmap_kernel_pix(x_ref, w1_ref, b1_ref, w2_ref, b2_ref, o_ref):
    """One lane-dense (C, TILE) pixel tile of one image."""
    x = x_ref[...]                                             # (C, TILE)
    h = jnp.dot(w1_ref[...], x, preferred_element_type=jnp.float32)
    h = h + b1_ref[...].astype(jnp.float32)                    # (C, 1) bcast over lanes
    h = h * jax.nn.sigmoid(h)                                  # f32 swish
    # NOTE: for bf16 inputs this rounds the swish output before the second
    # matmul; it is a no-op for f32 inputs.
    y = jnp.dot(w2_ref[...], h.astype(x.dtype), preferred_element_type=jnp.float32)
    y = y + b2_ref[...].astype(jnp.float32)
    o_ref[...] = y.astype(o_ref.dtype)


def _attnmap_kernel_batch(x_ref, w1_ref, b1_ref, w2_ref, b2_ref, o_ref, *, bn):
    """A block of `bn` whole images, each (C, HW), processed in one grid step."""
    w1 = w1_ref[...]
    w2 = w2_ref[...]
    b1 = b1_ref[...].astype(jnp.float32)
    b2 = b2_ref[...].astype(jnp.float32)
    # bn is small and static: a short unrolled loop of 2-D MXU matmuls avoids
    # the relayout a batched einsum with a non-batched LHS would incur.
    for i in range(bn):
        x = x_ref[i]                                           # (C, HW)
        h = jnp.dot(w1, x, preferred_element_type=jnp.float32) + b1
        h = h * jax.nn.sigmoid(h)                              # f32 swish
        y = jnp.dot(w2, h.astype(x.dtype), preferred_element_type=jnp.float32) + b2
        o_ref[i] = y.astype(o_ref.dtype)


_VMEM_BUDGET = 24 * 1024 * 1024   # headroom under the 32 MiB scoped-VMEM default


def attn_map_forward(x_nchw, w1, b1, w2, b2, *, tm_target=8192,
                     activation_dtype=None):
    """AttnMap forward: Conv2d(1x1) -> x*sigmoid(x) -> Conv2d(1x1).

    x_nchw: (N, C, H, W).  w1/w2: (C, C, 1, 1) torch Conv2d weights.  b: (C,).
    activation_dtype: optional (e.g. jnp.bfloat16) to halve HBM traffic; the
    output is produced in that dtype (numerics diverge from f32 at bf16 level).
    """
    N, C, H, W = x_nchw.shape
    HW = H * W

    # NCHW is already (N, C, H*W) per image — free reshape, no transpose/pad.
    x3d = x_nchw.reshape(N, C, HW)
    out_dtype = x_nchw.dtype
    if activation_dtype is not None:
        x3d = x3d.astype(activation_dtype)
        out_dtype = activation_dtype

    # Squeeze the 1x1 kernels; torch (C_out, C_in) layout is exactly what the
    # (C, M)-orientation matmul needs.  Biases broadcast over the lane dim.
    w1_2d = w1.reshape(C, C).astype(x3d.dtype)
    w2_2d = w2.reshape(C, C).astype(x3d.dtype)
    b1_2d = b1.reshape(C, 1)
    b2_2d = b2.reshape(C, 1)

    itemsize = jnp.dtype(x3d.dtype).itemsize
    weight_bytes = 2 * C * C * itemsize + 2 * C * 4

    if HW >= tm_target:
        # ---- Path A: one image per step, large lane-dense pixel tiles. ----
        tile = max(128, (tm_target // 128) * 128)
        # VMEM guard: double-buffered in+out tiles + f32 intermediates.
        while tile > 128 and (4 * C * tile * itemsize + 2 * C * tile * 4
                              + weight_bytes) > _VMEM_BUDGET:
            tile = max(128, ((tile // 2) // 128) * 128)
        # Prefer a tile that divides HW so every store tile is lane-dense
        # (no masked vst.msk on a ragged last tile).
        if HW % 128 == 0 and HW % tile != 0:
            d = tile
            while d >= 128:
                if HW % d == 0:
                    tile = d
                    break
                d -= 128
        # Keep the grid to >= 2 steps so both v7x TensorCores get work.
        if N * pl.cdiv(HW, tile) < 2:
            tile = max(128, ((HW // 2) // 128) * 128)

        grid = (N, pl.cdiv(HW, tile))
        kernel = _attnmap_kernel_pix
        in_specs = [
            pl.BlockSpec((None, C, tile), lambda n, j: (n, 0, j)),  # x tile (C, tile)
            pl.BlockSpec((C, C), lambda n, j: (0, 0)),              # W1 (resident)
            pl.BlockSpec((C, 1), lambda n, j: (0, 0)),              # b1
            pl.BlockSpec((C, C), lambda n, j: (0, 0)),              # W2 (resident)
            pl.BlockSpec((C, 1), lambda n, j: (0, 0)),              # b2
        ]
        out_specs = pl.BlockSpec((None, C, tile), lambda n, j: (n, 0, j))
        dims = ("parallel", "parallel")
    else:
        # ---- Path B: small feature maps; batch `bn` whole images per grid
        # step so per-step payload stays large (amortizes the fixed cost). ----
        bn = max(1, tm_target // max(HW, 1))
        bn = min(bn, N, 32)                       # cap the static unroll
        if N >= 2:
            bn = min(bn, max(1, N // 2))          # >= 2 grid steps for v7x
        while bn > 1 and (4 * bn * C * HW * itemsize + 2 * bn * C * HW * 4
                          + weight_bytes) > _VMEM_BUDGET:
            bn = max(1, bn // 2)

        grid = (pl.cdiv(N, bn),)
        kernel = functools.partial(_attnmap_kernel_batch, bn=bn)
        in_specs = [
            pl.BlockSpec((bn, C, HW), lambda n: (n, 0, 0)),  # bn whole images
            pl.BlockSpec((C, C), lambda n: (0, 0)),          # W1 (resident)
            pl.BlockSpec((C, 1), lambda n: (0, 0)),          # b1
            pl.BlockSpec((C, C), lambda n: (0, 0)),          # W2 (resident)
            pl.BlockSpec((C, 1), lambda n: (0, 0)),          # b2
        ]
        out_specs = pl.BlockSpec((bn, C, HW), lambda n: (n, 0, 0))
        dims = ("parallel",)

    out3d = pl.pallas_call(
        kernel,
        out_shape=jax.ShapeDtypeStruct((N, C, HW), out_dtype),
        grid_spec=pltpu.PrefetchScalarGridSpec(
            num_scalar_prefetch=0,
            grid=grid,
            in_specs=in_specs,
            out_specs=out_specs,
        ),
        compiler_params=pltpu.CompilerParams(dimension_semantics=dims),
    )(x3d, w1_2d, b1_2d, w2_2d, b2_2d)

    return out3d.reshape(N, C, H, W)


def _reference(x_nchw, w1, b1, w2, b2):
    """Pure-JAX reference of the torch forward for correctness checking."""
    N, C, H, W = x_nchw.shape
    x = x_nchw.reshape(N, C, H * W).astype(jnp.float32)
    w1f = w1.reshape(C, C).astype(jnp.float32)
    w2f = w2.reshape(C, C).astype(jnp.float32)
    h = jnp.einsum("oi,nim->nom", w1f, x) + b1.astype(jnp.float32).reshape(1, C, 1)
    h = h * jax.nn.sigmoid(h)
    y = jnp.einsum("oi,nim->nom", w2f, h) + b2.astype(jnp.float32).reshape(1, C, 1)
    return y.reshape(N, C, H, W).astype(x_nchw.dtype)


if __name__ == "__main__":
    key = jax.random.PRNGKey(0)
    N, C, H, W = 2, 32, 16, 16   # dim = 32

    k_x, k_w1, k_b1, k_w2, k_b2 = jax.random.split(key, 5)
    x = jax.random.normal(k_x, (N, C, H, W), dtype=jnp.float32)
    # Conv2d(dim, dim, 1) parameters: weight (C, C, 1, 1), bias (C,)
    w1 = jax.random.normal(k_w1, (C, C, 1, 1), dtype=jnp.float32) * 0.1
    b1 = jax.random.normal(k_b1, (C,), dtype=jnp.float32) * 0.1
    w2 = jax.random.normal(k_w2, (C, C, 1, 1), dtype=jnp.float32) * 0.1
    b2 = jax.random.normal(k_b2, (C,), dtype=jnp.float32) * 0.1

    ref = _reference(x, w1, b1, w2, b2)

    # Default config: HW (=256) < tm_target -> batched-images path (Path B).
    out_b = jax.block_until_ready(attn_map_forward(x, w1, b1, w2, b2))
    assert out_b.shape == (N, C, H, W)
    assert jnp.allclose(out_b, ref, atol=1e-4, rtol=1e-4), "Path B mismatch vs reference"

    # Pixel-tiled path (Path A), exercised cheaply by lowering the tile target.
    out_a = jax.block_until_ready(
        attn_map_forward(x, w1, b1, w2, b2, tm_target=128))
    assert out_a.shape == (N, C, H, W)
    assert jnp.allclose(out_a, ref, atol=1e-4, rtol=1e-4), "Path A mismatch vs reference"

    print("KERNEL_OK")
</pallas_src>

<mosaic_0001>
module attributes {stable_mosaic.version = 11 : i64} {
  func.func @_attnmap_kernel_batch(%arg0: i32, %arg1: memref<1x32x256xf32, #tpu.memory_space<vmem>>, %arg2: memref<32x32xf32, #tpu.memory_space<vmem>>, %arg3: memref<32x1xf32, #tpu.memory_space<vmem>>, %arg4: memref<32x32xf32, #tpu.memory_space<vmem>>, %arg5: memref<32x1xf32, #tpu.memory_space<vmem>>, %arg6: memref<1x32x256xf32, #tpu.memory_space<vmem>>) attributes {dimension_semantics = [#tpu.dimension_semantics<parallel>], iteration_bounds = array<i64: 2>, scalar_prefetch = 0 : i64, scratch_operands = 0 : i64, tpu.core_type = #tpu.core_type<tc>, window_params = [{transform_indices = @transform_0, window_bounds = array<i64: 1, 32, 256>}, {pipeline_mode = #tpu.pipeline_mode<synchronous>, transform_indices = @transform_1, window_bounds = array<i64: 32, 32>}, {pipeline_mode = #tpu.pipeline_mode<synchronous>, transform_indices = @transform_2, window_bounds = array<i64: 32, 1>}, {pipeline_mode = #tpu.pipeline_mode<synchronous>, transform_indices = @transform_3, window_bounds = array<i64: 32, 32>}, {pipeline_mode = #tpu.pipeline_mode<synchronous>, transform_indices = @transform_4, window_bounds = array<i64: 32, 1>}, {transform_indices = @transform_5, window_bounds = array<i64: 1, 32, 256>}]} {
    %c0 = arith.constant 0 : index
    %c0_0 = arith.constant 0 : index
    %0 = vector.load %arg2[%c0, %c0_0] : memref<32x32xf32, #tpu.memory_space<vmem>>, vector<32x32xf32>
    %c0_1 = arith.constant 0 : index
    %c0_2 = arith.constant 0 : index
    %1 = vector.load %arg4[%c0_1, %c0_2] : memref<32x32xf32, #tpu.memory_space<vmem>>, vector<32x32xf32>
    %c0_3 = arith.constant 0 : index
    %c0_4 = arith.constant 0 : index
    %2 = vector.load %arg3[%c0_3, %c0_4] : memref<32x1xf32, #tpu.memory_space<vmem>>, vector<32x1xf32>
    %c0_5 = arith.constant 0 : index
    %c0_6 = arith.constant 0 : index
    %3 = vector.load %arg5[%c0_5, %c0_6] : memref<32x1xf32, #tpu.memory_space<vmem>>, vector<32x1xf32>
    %c0_7 = arith.constant 0 : index
    %c0_8 = arith.constant 0 : index
    %c0_9 = arith.constant 0 : index
    %4 = vector.load %arg1[%c0_7, %c0_8, %c0_9] : memref<1x32x256xf32, #tpu.memory_space<vmem>>, vector<1x32x256xf32>
    %5 = vector.shape_cast %4 : vector<1x32x256xf32> to vector<32x256xf32>
    %cst = arith.constant dense<0.000000e+00> : vector<32x256xf32>
    %6 = tpu.matmul %0, %5, %cst {dimension_numbers = #tpu.dot_dimension_numbers<[1], [0], [0], [1], [0, 0, 1, 1], [], []>} : vector<32x32xf32>, vector<32x256xf32>, vector<32x256xf32> -> vector<32x256xf32>
    %7 = vector.broadcast %2 : vector<32x1xf32> to vector<32x256xf32>
    %8 = arith.addf %6, %7 : vector<32x256xf32>
    %9 = arith.negf %8 : vector<32x256xf32>
    %10 = math.exp %9 : vector<32x256xf32>
    %cst_10 = arith.constant 1.000000e+00 : f32
    %11 = vector.broadcast %cst_10 : f32 to vector<32x256xf32>
    %12 = arith.addf %11, %10 : vector<32x256xf32>
    %13 = arith.divf %11, %12 : vector<32x256xf32>
    %14 = arith.mulf %8, %13 : vector<32x256xf32>
    %cst_11 = arith.constant dense<0.000000e+00> : vector<32x256xf32>
    %15 = tpu.matmul %1, %14, %cst_11 {dimension_numbers = #tpu.dot_dimension_numbers<[1], [0], [0], [1], [0, 0, 1, 1], [], []>} : vector<32x32xf32>, vector<32x256xf32>, vector<32x256xf32> -> vector<32x256xf32>
    %16 = vector.broadcast %3 : vector<32x1xf32> to vector<32x256xf32>
    %17 = arith.addf %15, %16 : vector<32x256xf32>
    %c0_12 = arith.constant 0 : index
    %c0_13 = arith.constant 0 : index
    %c0_14 = arith.constant 0 : index
    %18 = vector.load %arg6[%c0_12, %c0_13, %c0_14] : memref<1x32x256xf32, #tpu.memory_space<vmem>>, vector<1x32x256xf32>
    %19 = vector.shape_cast %18 : vector<1x32x256xf32> to vector<32x256xf32>
    %20 = vector.shape_cast %17 : vector<32x256xf32> to vector<1x32x256xf32>
    tpu.vector_store %arg6[%c0_12, %c0_13, %c0_14], %20 {strides = array<i32>} : memref<1x32x256xf32, #tpu.memory_space<vmem>>, vector<1x32x256xf32>,
    return
  }
  func.func @transform_0(%arg0: i32) -> (i32, i32, i32) {
    %c0_i32 = arith.constant 0 : i32
    %c0_i32_0 = arith.constant 0 : i32
    %c0_i32_1 = arith.constant 0 : i32
    return %arg0, %c0_i32, %c0_i32_0 : i32, i32, i32
  }
  func.func @transform_1(%arg0: i32) -> (i32, i32) {
    %c0_i32 = arith.constant 0 : i32
    %c0_i32_0 = arith.constant 0 : i32
    %c0_i32_1 = arith.constant 0 : i32
    return %c0_i32, %c0_i32_0 : i32, i32
  }
  func.func @transform_2(%arg0: i32) -> (i32, i32) {
    %c0_i32 = arith.constant 0 : i32
    %c0_i32_0 = arith.constant 0 : i32
    %c0_i32_1 = arith.constant 0 : i32
    return %c0_i32, %c0_i32_0 : i32, i32
  }
  func.func @transform_3(%arg0: i32) -> (i32, i32) {
    %c0_i32 = arith.constant 0 : i32
    %c0_i32_0 = arith.constant 0 : i32
    %c0_i32_1 = arith.constant 0 : i32
    return %c0_i32, %c0_i32_0 : i32, i32
  }
  func.func @transform_4(%arg0: i32) -> (i32, i32) {
    %c0_i32 = arith.constant 0 : i32
    %c0_i32_0 = arith.constant 0 : i32
    %c0_i32_1 = arith.constant 0 : i32
    return %c0_i32, %c0_i32_0 : i32, i32
  }
  func.func @transform_5(%arg0: i32) -> (i32, i32, i32) {
    %c0_i32 = arith.constant 0 : i32
    %c0_i32_0 = arith.constant 0 : i32
    %c0_i32_1 = arith.constant 0 : i32
    return %arg0, %c0_i32, %c0_i32_0 : i32, i32, i32
  }
}

</mosaic_0001>

<bundles_post_ra>
// kernel: tpu_custom_call.1
= control target key start
LH: loop header
LB: loop body
LE: loop exit
PB: predicated region body
PF: predicated region fallthrough
CT: control target
= control target key end

     0   :  { %10 = vsyncpa [#allocation3], 0  ;;  %s1161_s0 = inlined_call_operand.hbm [shape: f32[2,32,256], index: 0, kind: input, shape index: {}]   ;;  %s1162_s1 = inlined_call_operand.vmem [shape: f32[32,32], index: 1, kind: input, shape index: {}]   ;;  %s1163_s2 = inlined_call_operand.vmem [shape: f32[32,1], index: 2, kind: input, shape index: {}]   ;;  %s1164_s3 = inlined_call_operand.vmem [shape: f32[32,32], index: 3, kind: input, shape index: {}]   ;;  %s1165_s4 = inlined_call_operand.vmem [shape: f32[32,1], index: 4, kind: input, shape index: {}]   ;;  %s1166_s5 = inlined_call_operand.hbm [shape: f32[2,32,256], index: 5, kind: output, shape index: {}]  }
   0x1   :  { %12 = vsyncpa [#allocation3 + $0x1], 0 }
   0x2   :  { %13 = vsyncpa [#allocation4], 0 }
   0x3   :  { %15 = vsyncpa [#allocation4 + $0x1], 0  ;;  %s931_s18 = smov 0   ;;  %s933_s19 = smov 0  }
   0x4   :  { %s935_s20 = smov 0   ;;  %s937_s21 = smov 0  }
   0x5 LB: > { %s952_s22 = sadd.s32 4294967295, %s891_s21   ;;  %s661_s23 = sadd.s32 4294967294, %s891_s21   ;;  %s891_s21 = sphi %s937_s21, %s1179_s21   ;;  %s887_s20 = sphi %s935_s20, %s1178_s20   ;;  %s883_s19 = sphi %s933_s19, %s1177_s19   ;;  %s879_s18 = sphi %s931_s18, %s1176_s18  }
   0x6   : > { %s956_s24 = sadd.s32 1, %s891_s21   ;;  %s28_s25 = sadd.s32 1, %s887_s20 }
   0x7   : > { %s25_s26 = ssub.s32 %s891_s21, %s956_s24  ;;  %p35_p0 = scmp.ne.s32.totalorder %s887_s20, %s883_s19 }
   0x8   : > { %p26_p1 = scmp.eq.s32.totalorder %s25_s26, 0  ;;  %p36_p2 = scmp.eq.s32.totalorder %s891_s21, 0 }
   0x9   : > { %p41_p3 = scmp.ne.s32.totalorder %s883_s19, %s879_s18  ;;  %p42_p4 = scmp.eq.s32.totalorder %s952_s22, 0 }
   0xa   : > { %s968_s27 = scalar_select %p26_p1, %s887_s20, %s28_s25  }
   0xb   : > { %p970_p5 = por %p36_p2, %p35_p0  ;;  %p974_p6 = por %p42_p4, %p41_p3 }
   0xc   : > { %p149_p7 = scmp.eq.s32.totalorder %s952_s22, 1  ;;  %p155_p8 = scmp.eq.s32.totalorder %s661_s23, 1 }
   0xd   : > { %p721_p10 = scmp.lt.s32.totalorder %s891_s21, 2  ;;  %s187_s7 = sand.u32 1, %s887_s20  }
   0xe   : > { %p981_p11 = por %p149_p7, %p35_p0  ;;  %p985_p12 = por %p155_p8, %p41_p3 }
   0xf   : > { %s691_s8 = sshll.u32 %s891_s21, 10  ;;  %s664_s9 = sshll.u32 %s187_s7, 6 }
  0x10   : > { %s1170_s30 = scalar_select %p981_p11, 1, 0 }
  0x11   : > { %s1171_s6 = scalar_select %p985_p12, 1, 0 }
  0x12   : > { %s994_s12 = scalar_lea.hbm %s1161_s0, %s691_s8  ;;  %s191_s13 = scalar_lea.vmem [#allocation2], %s664_s9 }
  0x13   : > { %s198_s14 = sshll.u32 %s191_s13, 4  ;;  %p998_p13 = pnand %p721_p10, %p970_p5  ;;  %s1002_s14 = int_to_ptr.vmem [resolvable:$true] %s198_s14 }
  0x14   : > { %s1004_s16 = scalar_lea.sflag [#allocation3], %s187_s7  ;;  %s795_s17 = scalar_lea.hbm %s994_s12, 1024 }
  0x15   : > { %p796_p0 = scmp.ne.s32.totalorder %s994_s12, %s795_s17  ;;  %p797_p1 = pneg %p998_p13 }
  0x16   : > { %s800_s26 = scalar_lea.hbm %s1161_s0, 2048  ;;  %p801_p4 = scmp.lt.u32.totalorder %s994_s12, %s1161_s0 }
  0x17   : > { %p798_p2 = pnand %p797_p1, %p796_p0  ;;  %p802_p5 = scmp.lt.u32.totalorder %s800_s26, %s795_s17 }
  0x18   : > { %p804_p8 = scmp.lt.u32.totalorder %s795_s17, %s994_s12 }
  0x19   : > { %p799_p3 = pneg %p798_p2  ;;  %p803_p7 = por %p802_p5, %p801_p4 }
  0x1b   : > { %p805_p10 = por %p804_p8, %p803_p7 }
  0x1d   : > { %p806_p9 = pnand %p805_p10, %p799_p3 }
  0x1f   : > { %809 = shalt.err (!%p806_p9)
}
  0x20   : > { %s810_s7 = scalar_lea.vmem %s1002_s14, 1024  ;;  %s893_s9 = smov [#allocation2]  }
  0x21   : > { %p811_p0 = scmp.ne.s32.totalorder %s1002_s14, %s810_s7  ;;  %s815_s10 = sshll.u32 %s893_s9, 4  ;;  %s816_s10 = int_to_ptr.vmem [resolvable:$false] %s815_s10 }
  0x22   : > { %s817_s11 = scalar_lea.vmem %s816_s10, 2048  ;;  %p818_p11 = scmp.lt.s32.totalorder %s1002_s14, %s816_s10 }
  0x23   : > { %p813_p2 = pnand %p811_p0, %p797_p1  ;;  %p819_p4 = scmp.lt.s32.totalorder %s817_s11, %s810_s7 }
  0x25   : > { %p814_p12 = pneg %p813_p2  ;;  %p820_p5 = por %p819_p4, %p818_p11 }
  0x27   : > { %p821_p7 = pnand %p820_p5, %p814_p12 }
  0x29   : > { %824 = shalt.err (!%p821_p7)
}
  0x2a   : > { %s894_s13 = smov 256   ;;  %s895_s17 = smov 16  }
  0x2b   : > { %716 = dma.hbm_to_vmem [thread:$0]  (!%p998_p13), %s994_s12, 1024, %s1002_s14, %s1004_s16, %s894_s13, %s894_s13, %s895_s17  }
  0x2c   : > { %p667_p9 = scmp.ge.s32.totalorder %s891_s21, 1  ;;  %p206_p1 = scmp.lt.s32.totalorder %s891_s21, 3 }
  0x2e   : > { %p207_p3 = pnand %p667_p9, %p206_p1 }
  0x2f   : > { %s1035_s23 = sand.u32 (!%p207_p3), 1, %s883_s19  }
  0x30   : > { %210 = sbr.rel (%p207_p3) target bundleno = 571 (0x23b), region = 40  ;;  %s668_s25 = sshll.u32 (!%p207_p3), %s1035_s23, 6 }
  0x31   : > { %s213_s26 = scalar_lea.sflag (!%p207_p3), [#allocation3], %s1035_s23  ;;  %s216_s28 = scalar_lea.vmem (!%p207_p3), [#allocation2], %s668_s25 }
  0x37   : > { %870 = dma.done.wait (%p974_p6), %s213_s26, 1024  }
  0x38   : > { %872 = vsyncadd (%p974_p6), %s213_s26, 4294966272  ;;  %v896_v0 = vmov 0.0   ;;  %v897_v1 = vmov 0   ;;  %v260_v2 = vld [vmem:[%s216_s28 + $0x8] sm:$0xff]  ;;  %v262_v3 = vld [vmem:[%s216_s28 + $0x18] sm:$0xff]  ;;  %vm287_vm0 = vcmask 261120  }
  0x39   : > { %364 = vmatprep.mubr.f32.mxu0 %v896_v0  ;;  %761 = vset.pattern.permute.xlu0 %v897_v1  ;;  %v259_v4 = vld [vmem:[%s216_s28] sm:$0xff]  ;;  %v693_v5 = vpack.c.bf16 %v262_v3, %v260_v2  ;;  %v261_v6 = vld [vmem:[%s216_s28 + $0x10] sm:$0xff]  ;;  %v264_v7 = vld [vmem:[%s216_s28 + $0x28] sm:$0xff]  ;;  %s242_s16 = scalar_lea.vmem [#allocation5], %s668_s25  ;;  %s692_s7 = sshll.u32 %s952_s22, 10 }
  0x3a   : > { %762 = vset.pattern.permute.xlu1 %v897_v1  ;;  %541 = vmatprep.mubr.f32.mxu1 %v896_v0  ;;  %v266_v8 = vld [vmem:[%s216_s28 + $0x38] sm:$0xff]  ;;  %v695_v9 = vpack.c.bf16 %v261_v6, %v259_v4  ;;  %v263_v11 = vld [vmem:[%s216_s28 + $0x20] sm:$0xff]  ;;  %v265_v12 = vld [vmem:[%s216_s28 + $0x30] sm:$0xff]  ;;  %s588_s8 = sshll.u32 %s242_s16, 4  ;;  %s1117_s10 = scalar_lea.hbm %s1166_s5, %s692_s7  ;;  %s1112_s8 = int_to_ptr.vmem [resolvable:$true] %s588_s8 }
  0x3b   : > { %v697_v10 = vpack.c.bf16 %v266_v8, %v264_v7  ;;  %694 = vmatprep.subr.bf16.mxu0 %v693_v5  ;;  %v699_v13 = vpack.c.bf16 %v265_v12, %v263_v11  ;;  %v251_v14 = vld [vmem:[%s1163_s2] sm:$0xff]  ;;  %v253_v15 = vld [vmem:[%s1163_s2 + $0x10] sm:$0xff]  ;;  %v252_v16 = vld [vmem:[%s1163_s2 + $0x8] sm:$0xff]  ;;  %s575_s22 = scalar_lea.sflag [#allocation4], %s1035_s23  ;;  %s825_s11 = scalar_lea.vmem %s1112_s8, 1024 }
  0x3c   : > { %696 = vmatpush1.bf16.msra.mxu0 %v695_v9  ;;  %269 = vperm.xlu0 %761, %v251_v14   ;;  %v254_v17 = vld [vmem:[%s1163_s2 + $0x18] sm:$0xff]  ;;  %v243_v18 = vld [vmem:[%s1162_s1] sm:$0xff]  ;;  %v256_v20 = vld [vmem:[%s1165_s4 + $0x8] sm:$0xff]  ;;  %p826_p6 = scmp.ne.s32.totalorder %s1112_s8, %s825_s11  ;;  %p1173_p11 = scmp.ne.s32.totalorder %s1170_s30, 0 }
  0x3d   : > { %698 = vmatprep.subr.bf16.mxu0 %v697_v10  ;;  %279 = vperm.xlu1 %762, %v253_v15   ;;  %v255_v19 = vld [vmem:[%s1165_s4] sm:$0xff]  ;;  %v244_v21 = vld [vmem:[%s1162_s1 + $0x8] sm:$0xff]  ;;  %v257_v22 = vld [vmem:[%s1165_s4 + $0x10] sm:$0xff]  ;;  %s898_s13 = smov [#allocation5]  }
  0x3e   : > { %v258_v23 = vld [vmem:[%s1165_s4 + $0x18] sm:$0xff]  ;;  %v245_v24 = vld [vmem:[%s1162_s1 + $0x10] sm:$0xff]  ;;  %p827_p12 = pnand %p826_p6, %p1173_p11  ;;  %s829_s17 = sshll.u32 %s898_s13, 4  ;;  %s830_s17 = int_to_ptr.vmem [resolvable:$false] %s829_s17 }
  0x3f   : > { %v246_v25 = vld [vmem:[%s1162_s1 + $0x18] sm:$0xff]  ;;  %s831_s26 = scalar_lea.vmem %s830_s17, 2048  ;;  %p832_p8 = scmp.lt.s32.totalorder %s1112_s8, %s830_s17 }
  0x40   : > { %700 = vmatpush1.bf16.msra.mxu0 %v699_v13  ;;  %274 = vperm.xlu0 %761, %v252_v16   ;;  %p828_p13 = pneg %p827_p12  ;;  %p833_p10 = scmp.lt.s32.totalorder %s831_s26, %s825_s11 }
  0x41   : > { %284 = vperm.xlu1 %762, %v254_v17  }
  0x42   : > { %p834_p0 = por %p833_p10, %p832_p8 }
  0x43   : > { %670 = vmatmul.mubr.msk.f32.vlgmr.msra.gmra.mrb[0].mxu0 %vm287_vm0, %v243_v18 }
  0x44   : > { %370 = vmatprep.mubr.f32.mxu0 %v896_v0  ;;  %447 = vperm.xlu0 %761, %v255_v19   ;;  %p835_p2 = pnand %p834_p0, %p828_p13 }
  0x45   : > { %452 = vperm.xlu1 %762, %v256_v20  }
  0x47   : > { %671 = vmatmul.mubr.msk.f32.gmra.mrb[2].mxu0 %vm287_vm0, %v244_v21 }
  0x48   : > { %376 = vmatprep.mubr.f32.mxu0 %v896_v0  ;;  %457 = vperm.xlu0 %761, %v257_v22  }
  0x49   : > { %462 = vperm.xlu1 %762, %v258_v23  }
  0x4b   : > { %672 = vmatmul.mubr.msk.f32.gmra.mrb[4].mxu0 %vm287_vm0, %v245_v24 }
  0x4c   : > { %382 = vmatprep.mubr.f32.mxu0 %v896_v0 }
  0x4f   : > { %673 = vmatmul.mubr.msk.f32.gmra.mrb[6].mxu0 %vm287_vm0, %v246_v25 }
  0xbb   : > { %v270_v26 = vpop.permute.xlu0 %269 }
  0xbc   : > { %v280_v37 = vpop.permute.xlu1 %279 }
  0xbf   : > { %v275_v32 = vpop.permute.xlu0 %274 }
  0xc0   : > { %v285_v46 = vpop.permute.xlu1 %284 }
 0x116   : > { %v366_v27 = vpop.f32.mrb[0].mxu0 }
 0x117   : > { %v367_v28 = vadd.f32 %v366_v27, %v270_v26  ;;  %v368_v29 = vpop.f32.mrb[1].mxu0  ;;  %v247_v27 = vld [vmem:[%s1164_s3] sm:$0xff] }
 0x118   : > { %v369_v30 = vadd.f32 %v368_v29, %v270_v26  ;;  %v249_v29 = vld [vmem:[%s1164_s3 + $0x10] sm:$0xff] }
 0x119   : > { %v674_v31 = vmul.f32 -1.442695, %v367_v28 }
 0x11a   : > { %v675_v33 = vmul.f32 -1.442695, %v369_v30  ;;  %v372_v34 = vpop.f32.mrb[2].mxu0 }
 0x11b   : > { %763 = vpow2.f32 %v674_v31  ;;  %v373_v35 = vadd.f32 %v372_v34, %v275_v32  ;;  %v374_v36 = vpop.f32.mrb[3].mxu0  ;;  %v448_v31 = vpop.permute.xlu0 %447 }
 0x11c   : > { %765 = vpow2.f32 %v675_v33  ;;  %v375_v38 = vadd.f32 %v374_v36, %v275_v32  ;;  %v453_v36 = vpop.permute.xlu1 %452 }
 0x11d   : > { %v676_v39 = vmul.f32 -1.442695, %v373_v35 }
 0x11e   : > { %v677_v40 = vmul.f32 -1.442695, %v375_v38  ;;  %v378_v41 = vpop.f32.mrb[4].mxu0 }
 0x11f   : > { %767 = vpow2.f32 %v676_v39  ;;  %v379_v42 = vadd.f32 %v378_v41, %v280_v37  ;;  %v380_v43 = vpop.f32.mrb[5].mxu0 }
 0x120   : > { %769 = vpow2.f32 %v677_v40  ;;  %v381_v44 = vadd.f32 %v380_v43, %v280_v37  ;;  %v458_v40 = vpop.permute.xlu0 %457 }
 0x121   : > { %v678_v45 = vmul.f32 -1.442695, %v379_v42 }
 0x122   : > { %v679_v47 = vmul.f32 -1.442695, %v381_v44  ;;  %v384_v48 = vpop.f32.mrb[6].mxu0 }
 0x123   : > { %771 = vpow2.f32 %v678_v45  ;;  %v385_v49 = vadd.f32 %v384_v48, %v285_v46  ;;  %v386_v50 = vpop.f32.mrb[7].mxu0  ;;  %v463_v45 = vpop.permute.xlu1 %462 }
 0x124   : > { %773 = vpow2.f32 %v679_v47  ;;  %v387_v51 = vadd.f32 %v386_v50, %v285_v46 }
 0x125   : > { %v764_v52 = vpop.eup %763  ;;  %v680_v53 = vmul.f32 -1.442695, %v385_v49 }
 0x126   : > { %v766_v54 = vpop.eup %765  ;;  %v413_v55 = vadd.f32 1.0, %v764_v52  ;;  %v681_v56 = vmul.f32 -1.442695, %v387_v51 }
 0x127   : > { %v414_v57 = vadd.f32 1.0, %v766_v54  ;;  %775 = vpow2.f32 %v680_v53 }
 0x128   : > { %777 = vrcp.f32 %v413_v55 }
 0x129   : > { %v768_v58 = vpop.eup %767  ;;  %779 = vpow2.f32 %v681_v56 }
 0x12a   : > { %v770_v59 = vpop.eup %769  ;;  %v415_v60 = vadd.f32 1.0, %v768_v58  ;;  %781 = vrcp.f32 %v414_v57 }
 0x12b   : > { %v416_v61 = vadd.f32 1.0, %v770_v59 }
 0x12c   : > { %783 = vrcp.f32 %v415_v60 }
 0x12d   : > { %v772_v62 = vpop.eup %771  ;;  %785 = vrcp.f32 %v416_v61 }
 0x12e   : > { %v774_v63 = vpop.eup %773  ;;  %v417_v1 = vadd.f32 1.0, %v772_v62 }
 0x12f   : > { %v418_v3 = vadd.f32 1.0, %v774_v63 }
 0x130   : > { %787 = vrcp.f32 %v417_v1 }
 0x131   : > { %v776_v2 = vpop.eup %775 }
 0x132   : > { %v419_v4 = vadd.f32 1.0, %v776_v2  ;;  %v778_v5 = vpop.eup %777 }
 0x133   : > { %v780_v6 = vpop.eup %779  ;;  %v437_v11 = vmul.f32 %v778_v5, %v367_v28  ;;  %v248_v28 = vld [vmem:[%s1164_s3 + $0x8] sm:$0xff] }
 0x134   : > { %789 = vrcp.f32 %v419_v4  ;;  %v782_v7 = vpop.eup %781  ;;  %v420_v8 = vadd.f32 1.0, %v780_v6 }
 0x135   : > { %791 = vrcp.f32 %v418_v3  ;;  %v438_v13 = vmul.f32 %v782_v7, %v369_v30  ;;  %v250_v30 = vld [vmem:[%s1164_s3 + $0x18] sm:$0xff] }
 0x136   : > { %v784_v9 = vpop.eup %783  ;;  %793 = vrcp.f32 %v420_v8 }
 0x137   : > { %v786_v10 = vpop.eup %785  ;;  %v439_v12 = vmul.f32 %v784_v9, %v373_v35 }
 0x138   : > { %v440_v14 = vmul.f32 %v786_v10, %v375_v38 }
 0x139   : > { %v703_v15 = vpack.c.bf16 %v439_v12, %v437_v11 }
 0x13a   : > { %v701_v16 = vpack.c.bf16 %v440_v14, %v438_v13  ;;  %v788_v17 = vpop.eup %787 }
 0x13b   : > { %v441_v20 = vmul.f32 %v788_v17, %v379_v42 }
 0x13c   : > { %702 = vmatprep.subr.bf16.mxu1 %v701_v16 }
 0x13d   : > { %704 = vmatpush1.bf16.msra.mxu1 %v703_v15 }
 0x13e   : > { %v790_v18 = vpop.eup %789 }
 0x13f   : > { %v792_v19 = vpop.eup %791  ;;  %v443_v21 = vmul.f32 %v790_v18, %v385_v49 }
 0x140   : > { %v794_v22 = vpop.eup %793  ;;  %v442_v24 = vmul.f32 %v792_v19, %v381_v44 }
 0x141   : > { %v707_v23 = vpack.c.bf16 %v443_v21, %v441_v20  ;;  %v444_v25 = vmul.f32 %v794_v22, %v387_v51 }
 0x143   : > { %v705_v26 = vpack.c.bf16 %v444_v25, %v442_v24 }
 0x145   : > { %706 = vmatprep.subr.bf16.mxu1 %v705_v26 }
 0x146   : > { %708 = vmatpush1.bf16.msra.mxu1 %v707_v23 }
 0x149   : > { %682 = vmatmul.mubr.msk.f32.vlgmr.msra.gmra.mrb[0].mxu1 %vm287_vm0, %v247_v27 }
 0x14a   : > { %547 = vmatprep.mubr.f32.mxu1 %v896_v0 }
 0x14d   : > { %683 = vmatmul.mubr.msk.f32.gmra.mrb[2].mxu1 %vm287_vm0, %v248_v28 }
 0x14e   : > { %553 = vmatprep.mubr.f32.mxu1 %v896_v0 }
 0x151   : > { %684 = vmatmul.mubr.msk.f32.gmra.mrb[4].mxu1 %vm287_vm0, %v249_v29 }
 0x152   : > { %559 = vmatprep.mubr.f32.mxu1 %v896_v0 }
 0x155   : > { %685 = vmatmul.mubr.msk.f32.gmra.mrb[6].mxu1 %vm287_vm0, %v250_v30 }
 0x21c   : > { %v543_v32 = vpop.f32.mrb[0].mxu1 }
 0x21d   : > { %v544_v33 = vadd.f32 %v543_v32, %v448_v31  ;;  %v545_v34 = vpop.f32.mrb[1].mxu1 }
 0x21e   : > { %v546_v35 = vadd.f32 %v545_v34, %v448_v31 }
 0x21f   : > { %566 = vst [vmem:[%s242_s16] sm:$0xff] %v544_v33 }
 0x220   : > { %567 = vst [vmem:[%s242_s16 + $0x8] sm:$0xff] %v546_v35  ;;  %v549_v37 = vpop.f32.mrb[2].mxu1 }
 0x221   : > { %v550_v38 = vadd.f32 %v549_v37, %v453_v36  ;;  %v551_v0 = vpop.f32.mrb[3].mxu1 }
 0x222   : > { %v552_v39 = vadd.f32 %v551_v0, %v453_v36 }
 0x223   : > { %568 = vst [vmem:[%s242_s16 + $0x10] sm:$0xff] %v550_v38 }
 0x224   : > { %569 = vst [vmem:[%s242_s16 + $0x18] sm:$0xff] %v552_v39  ;;  %v555_v41 = vpop.f32.mrb[4].mxu1 }
 0x225   : > { %v556_v42 = vadd.f32 %v555_v41, %v458_v40  ;;  %v557_v43 = vpop.f32.mrb[5].mxu1 }
 0x226   : > { %v558_v44 = vadd.f32 %v557_v43, %v458_v40 }
 0x227   : > { %570 = vst [vmem:[%s242_s16 + $0x20] sm:$0xff] %v556_v42 }
 0x228   : > { %571 = vst [vmem:[%s242_s16 + $0x28] sm:$0xff] %v558_v44  ;;  %v561_v46 = vpop.f32.mrb[6].mxu1 }
 0x229   : > { %v562_v47 = vadd.f32 %v561_v46, %v463_v45  ;;  %v563_v48 = vpop.f32.mrb[7].mxu1 }
 0x22a   : > { %v564_v49 = vadd.f32 %v563_v48, %v463_v45 }
 0x22b   : > { %572 = vst [vmem:[%s242_s16 + $0x30] sm:$0xff] %v562_v47 }
 0x22c   : > { %573 = vst [vmem:[%s242_s16 + $0x38] sm:$0xff] %v564_v49 }
 0x22d   : > { %838 = shalt.err (!%p835_p2)
}
 0x22e   : > { %s839_s28 = scalar_lea.hbm %s1117_s10, 1024  ;;  %s843_s14 = scalar_lea.hbm %s1166_s5, 2048 }
 0x22f   : > { %p840_p4 = scmp.ne.s32.totalorder %s1117_s10, %s839_s28  ;;  %p844_p9 = scmp.lt.u32.totalorder %s1117_s10, %s1166_s5 }
 0x230   : > { %p845_p1 = scmp.lt.u32.totalorder %s843_s14, %s839_s28  ;;  %p847_p6 = scmp.lt.u32.totalorder %s839_s28, %s1117_s10 }
 0x231   : > { %p841_p5 = pnand %p840_p4, %p1173_p11 }
 0x232   : > { %p846_p3 = por %p845_p1, %p844_p9 }
 0x233   : > { %p842_p7 = pneg %p841_p5 }
 0x234   : > { %p848_p12 = por %p847_p6, %p846_p3 }
 0x236   : > { %p849_p13 = pnand %p848_p12, %p842_p7 }
 0x238   : > { %852 = shalt.err (!%p849_p13)
}
 0x239   : > { %s899_s7 = smov 256   ;;  %s900_s25 = smov 16  }
 0x23a   : > { %711 = dma.vmem_to_hbm [thread:$0]  (%p1173_p11), %s1112_s8, 1024, %s1117_s10, %s575_s22, %s899_s7, %s899_s7, %s900_s25  }
 0x23b PF: > { %s603_s9 = sand.u32 1, %s879_s18   ;;  %p1174_p8 = scmp.ne.s32.totalorder %s1171_s6, 0 }
 0x23c   : > { %p1175_p10 = scmp.ge.s32.totalorder %s891_s21, 2  ;;  %s604_s11 = scalar_lea.sflag [#allocation4], %s603_s9 }
 0x23e   : > { %p718_p0 = pnand %p1175_p10, %p1174_p8 }
 0x240   : > { %874 = dma.done.wait (!%p718_p0), %s604_s11, 1024  }
 0x241   : > { %876 = vsyncadd (!%p718_p0), %s604_s11, 4294966272  ;;  %p18_p2 = scmp.ge.s32.totalorder %s956_s24, 4   ;;  %s1176_s18 = smov %s883_s19 }
 0x242   : > { %s1177_s19 = smov %s887_s20  ;;  %s1178_s20 = smov %s968_s27 }
 0x243   : > { %s1179_s21 = smov %s956_s24  ;;  %20 = sbr.rel (!%p18_p2) target bundleno = 5 (0x5), region = 85 }
 0x24a   :  { %609 = vsyncpa [#allocation3], 1 }
 0x24b   :  { %611 = vsyncpa [#allocation3 + $0x1], 1 }
 0x24c   :  { %612 = vsyncpa [#allocation4], 1 }
 0x24d   :  { %614 = vsyncpa [#allocation4 + $0x1], 1 }

</bundles_post_ra>
